<compile_context>
chip_gen: v7x
topology: tpu7x:2x2x1
jax: 0.10.0
libtpu: 0.0.40
codegen_flags: <defaults>
</compile_context>

<pallas_src>
import functools

import jax
import jax.numpy as jnp
from jax.experimental import pallas as pl
from jax.experimental.pallas import tpu as pltpu


# ---------------------------------------------------------------------------
# VMEM budgeting helpers
# ---------------------------------------------------------------------------
def _round_up(x, m):
    return ((x + m - 1) // m) * m


def _vmem_limit_bytes():
    """Generation-aware scoped-VMEM limit (half of physical, 16..64 MiB)."""
    cap = 128 << 20
    try:
        cap = int(getattr(pltpu.get_tpu_info(), "vmem_capacity_bytes", cap))
    except Exception:
        pass
    return max(16 << 20, min(cap // 2, 64 << 20))


def _choose_c_block(C, T, itemsize, block_budget_bytes, min_blocks=1):
    """Channel-block size for (c_blk, T) tiles.

    Budgeted on the f32 working set (kernel upcasts to f32 for statistics),
    aligned to the dtype's sublane packing, preferring exact divisors of C so
    no padding / masked tail is needed.  Returns (c_blk, C_pad) with
    C_pad % c_blk == 0 and C_pad >= C.
    """
    align = max(8, 32 // max(1, itemsize))      # 8 f32 / 16 bf16 / 32 int8
    max_c = max(align, ((block_budget_bytes // 4) // max(T, 1)) // align * align)
    if min_blocks > 1 and C >= min_blocks * align:
        # Cap the block so the channel axis splits into >= min_blocks blocks.
        max_c = min(max_c, max(align, (C // min_blocks) // align * align))
    else:
        min_blocks = 1
    if C <= max_c and min_blocks == 1:
        return C, C                              # single exact block
    # Prefer an aligned divisor of C (exact tiling, no channel padding).
    cb = min(max_c, (C // align) * align)
    while cb >= align:
        if C % cb == 0:
            return cb, C
        cb -= align
    # No aligned divisor under the budget: pad channels to a block multiple.
    cb = max(align, (max_c // align) * align)
    return cb, _round_up(C, cb)


# ---------------------------------------------------------------------------
# Kernel A: T on the lane axis (main path, T >= 128) — blocks (1, c_blk, T).
# gamma/beta are resident per batch row; channels sliced in-kernel.
# ---------------------------------------------------------------------------
def _adain_norm_tlanes_kernel(gamma_ref, beta_ref, x_ref, o_ref, *,
                              eps, inv_n, inv_nm1, align):
    c_blk = x_ref.shape[1]
    c0 = pl.multiple_of(pl.program_id(1) * c_blk, align)
    gamma = gamma_ref[0, pl.ds(c0, c_blk), :]            # (c_blk, 1) f32
    beta = beta_ref[0, pl.ds(c0, c_blk), :]              # (c_blk, 1) f32

    x = x_ref[0].astype(jnp.float32)                     # (c_blk, T)
    # Single fused pass for the statistics: sum and sum-of-squares.
    s = jnp.sum(x, axis=-1, keepdims=True)               # (c_blk, 1)
    mean = s * inv_n
    var = jnp.maximum(jnp.sum(x * x, axis=-1, keepdims=True) - s * mean,
                      0.0) * inv_nm1                     # unbiased (T-1)
    inv_std = pl.reciprocal(jnp.sqrt(var) + eps, approx=False)   # eps on std

    # Fold normalize + modulation into one per-channel scale/shift (one FMA).
    scale = gamma * inv_std
    shift = beta - mean * scale
    o_ref[0] = (x * scale + shift).astype(o_ref.dtype)


# ---------------------------------------------------------------------------
# Kernel B: C on the lane axis (short-sequence fallback, T < 128) —
# blocks (1, T, C), reduction over the sublane (time) axis, lane-dense stores.
# ---------------------------------------------------------------------------
def _adain_norm_clanes_kernel(gamma_ref, beta_ref, x_ref, o_ref, *,
                              eps, inv_n, inv_nm1):
    x = x_ref[0].astype(jnp.float32)                     # (T, C)
    gamma = gamma_ref[0]                                 # (1, C) f32
    beta = beta_ref[0]                                   # (1, C) f32

    s = jnp.sum(x, axis=0, keepdims=True)                # (1, C)
    mean = s * inv_n
    var = jnp.maximum(jnp.sum(x * x, axis=0, keepdims=True) - s * mean,
                      0.0) * inv_nm1
    inv_std = pl.reciprocal(jnp.sqrt(var) + eps, approx=False)

    scale = gamma * inv_std
    shift = beta - mean * scale
    o_ref[0] = (x * scale + shift).astype(o_ref.dtype)


# ---------------------------------------------------------------------------
# Wrapper
# ---------------------------------------------------------------------------
def conditional_adain_1d(x, cond, weight, bias, *, eps=1e-5):
    """x: (B, C, T); cond: (B, cond_dim).

    weight: (2*C, cond_dim), bias: (2*C,) -- same as nn.Linear(cond_dim, 2*C).
    Returns (B, C, T).  NOTE: T == 1 yields NaN (unbiased variance, matches
    torch.std) -- guard at the call site if needed.
    """
    if cond is None:                       # host-side branch, matches PyTorch
        print("No conditioning vector provided")
        return x

    B, C, T = x.shape

    # ---- affine: tiny GEMM (M = B rows) done in plain XLA ------------------
    # lax.dot_general contracts on cond_dim directly (no weight.T in HBM) and
    # XLA fuses the bias add + gamma/beta slicing.
    gb = jax.lax.dot_general(
        cond.astype(jnp.float32), weight.astype(jnp.float32),
        dimension_numbers=(((1,), (1,)), ((), ())),
        preferred_element_type=jnp.float32) + bias.astype(jnp.float32)
    gamma = gb[:, :C]                      # (B, C) f32
    beta = gb[:, C:]                       # (B, C) f32

    itemsize = int(jnp.dtype(x.dtype).itemsize)
    vmem_limit = _vmem_limit_bytes()
    block_budget = min(vmem_limit // 8, 2 << 20)   # f32 working-set budget
    inv_n = 1.0 / T
    inv_nm1 = (1.0 / (T - 1)) if T > 1 else float("nan")   # matches torch.std

    # ---- short-sequence path: C on lanes (avoids masked lane-sparse stores) -
    if T < 128 and 6 * T * C * 4 <= (vmem_limit * 3) // 4:
        x_t = jnp.swapaxes(x, 1, 2)                        # (B, T, C)
        gamma_r = gamma.reshape(B, 1, C)
        beta_r = beta.reshape(B, 1, C)
        kernel = functools.partial(_adain_norm_clanes_kernel,
                                   eps=eps, inv_n=inv_n, inv_nm1=inv_nm1)
        out_t = pl.pallas_call(
            kernel,
            out_shape=jax.ShapeDtypeStruct((B, T, C), x.dtype),
            grid_spec=pltpu.PrefetchScalarGridSpec(
                num_scalar_prefetch=0,
                grid=(B,),
                in_specs=[
                    pl.BlockSpec((1, 1, C), lambda b: (b, 0, 0)),   # gamma
                    pl.BlockSpec((1, 1, C), lambda b: (b, 0, 0)),   # beta
                    pl.BlockSpec((1, T, C), lambda b: (b, 0, 0)),   # x
                ],
                out_specs=pl.BlockSpec((1, T, C), lambda b: (b, 0, 0)),
            ),
            compiler_params=pltpu.CompilerParams(
                dimension_semantics=("parallel",),
                vmem_limit_bytes=vmem_limit),
            cost_estimate=pl.CostEstimate(
                flops=int(7 * B * C * T),
                transcendentals=int(2 * B * C),
                bytes_accessed=int(2 * B * C * T * itemsize + 8 * B * C)),
        )(gamma_r, beta_r, x_t)
        return jnp.swapaxes(out_t, 1, 2)

    # ---- main path: T on lanes, grid over (batch, channel blocks) ----------
    min_blocks = 2 if B == 1 else 1        # keep both v7x TensorCores busy
    c_blk, C_pad = _choose_c_block(C, T, itemsize, block_budget, min_blocks)
    n_cb = C_pad // c_blk

    x_in = x
    if C_pad != C:                         # awkward C: pad instead of OOM-ing
        x_in = jnp.pad(x, ((0, 0), (0, C_pad - C), (0, 0)))
        gamma = jnp.pad(gamma, ((0, 0), (0, C_pad - C)))
        beta = jnp.pad(beta, ((0, 0), (0, C_pad - C)))
    gamma_r = gamma.reshape(B, C_pad, 1)
    beta_r = beta.reshape(B, C_pad, 1)

    align = max(8, 32 // max(1, itemsize))
    kernel = functools.partial(_adain_norm_tlanes_kernel,
                               eps=eps, inv_n=inv_n, inv_nm1=inv_nm1,
                               align=align)
    out = pl.pallas_call(
        kernel,
        out_shape=jax.ShapeDtypeStruct((B, C_pad, T), x.dtype),
        grid_spec=pltpu.PrefetchScalarGridSpec(
            num_scalar_prefetch=0,
            grid=(B, n_cb),
            in_specs=[
                # gamma/beta: resident per batch row (re-DMA'd only when b
                # changes), channels sliced in-kernel with pl.ds.
                pl.BlockSpec((1, C_pad, 1), lambda b, c: (b, 0, 0)),
                pl.BlockSpec((1, C_pad, 1), lambda b, c: (b, 0, 0)),
                pl.BlockSpec((1, c_blk, T), lambda b, c: (b, c, 0)),   # x
            ],
            out_specs=pl.BlockSpec((1, c_blk, T), lambda b, c: (b, c, 0)),
        ),
        compiler_params=pltpu.CompilerParams(
            dimension_semantics=("parallel", "parallel"),
            vmem_limit_bytes=vmem_limit),
        cost_estimate=pl.CostEstimate(
            flops=int(7 * B * C_pad * T),
            transcendentals=int(2 * B * C_pad),
            bytes_accessed=int(2 * B * C_pad * T * itemsize + 8 * B * C_pad)),
    )(gamma_r, beta_r, x_in)

    if C_pad != C:
        out = out[:, :C, :]
    return out


# ---------------------------------------------------------------------------
# Pure-JAX reference (matches the PyTorch module)
# ---------------------------------------------------------------------------
def _reference(x, cond, weight, bias, eps=1e-5):
    gb = cond @ weight.T + bias            # (B, 2*C)
    C = x.shape[1]
    gamma = gb[:, :C][..., None]           # (B, C, 1)
    beta = gb[:, C:][..., None]
    mean = jnp.mean(x, axis=-1, keepdims=True)
    var = jnp.sum((x - mean) ** 2, axis=-1, keepdims=True) / (x.shape[-1] - 1)
    std = jnp.sqrt(var) + eps
    return gamma * (x - mean) / std + beta


if __name__ == "__main__":
    key = jax.random.PRNGKey(0)

    def make_case(key, B, C, T, cond_dim):
        kx, kc, kw, kb = jax.random.split(key, 4)
        x = jax.random.normal(kx, (B, C, T), dtype=jnp.float32)
        cond = jax.random.normal(kc, (B, cond_dim), dtype=jnp.float32)
        bound = 1.0 / jnp.sqrt(cond_dim)
        weight = jax.random.uniform(kw, (2 * C, cond_dim), jnp.float32,
                                    -bound, bound)
        bias = jax.random.uniform(kb, (2 * C,), jnp.float32, -bound, bound)
        return x, cond, weight, bias

    # Case 1: module-native small shapes (T < 128 -> lane-dense C path).
    k1, k2 = jax.random.split(key)
    x, cond, weight, bias = make_case(k1, B=2, C=4, T=16, cond_dim=1024)
    out = jax.block_until_ready(conditional_adain_1d(x, cond, weight, bias))
    ref = _reference(x, cond, weight, bias)
    assert out.shape == x.shape
    assert jnp.allclose(out, ref, atol=1e-4, rtol=1e-4), "case1 mismatch"

    # Case 2: B=1, longer sequence -> exercises the T-on-lanes path with the
    # channel axis split into >= 2 parallel blocks (resident gamma/beta slice).
    x2, cond2, weight2, bias2 = make_case(k2, B=1, C=16, T=256, cond_dim=64)
    out2 = jax.block_until_ready(conditional_adain_1d(x2, cond2, weight2, bias2))
    ref2 = _reference(x2, cond2, weight2, bias2)
    assert out2.shape == x2.shape
    assert jnp.allclose(out2, ref2, atol=1e-4, rtol=1e-4), "case2 mismatch"

    print("KERNEL_OK")
</pallas_src>

<mosaic_0001>
module attributes {stable_mosaic.version = 11 : i64} {
  func.func @_adain_norm_clanes_kernel(%arg0: i32, %arg1: memref<1x1x4xf32, #tpu.memory_space<vmem>>, %arg2: memref<1x1x4xf32, #tpu.memory_space<vmem>>, %arg3: memref<1x16x4xf32, #tpu.memory_space<vmem>>, %arg4: memref<1x16x4xf32, #tpu.memory_space<vmem>>) attributes {dimension_semantics = [#tpu.dimension_semantics<parallel>], iteration_bounds = array<i64: 2>, scalar_prefetch = 0 : i64, scratch_operands = 0 : i64, tpu.core_type = #tpu.core_type<tc>, window_params = [{transform_indices = @transform_0, window_bounds = array<i64: 1, 1, 4>}, {transform_indices = @transform_1, window_bounds = array<i64: 1, 1, 4>}, {transform_indices = @transform_2, window_bounds = array<i64: 1, 16, 4>}, {transform_indices = @transform_3, window_bounds = array<i64: 1, 16, 4>}]} {
    %c0 = arith.constant 0 : index
    %c0_0 = arith.constant 0 : index
    %c0_1 = arith.constant 0 : index
    %0 = vector.load %arg3[%c0, %c0_0, %c0_1] : memref<1x16x4xf32, #tpu.memory_space<vmem>>, vector<1x16x4xf32>
    %1 = vector.shape_cast %0 : vector<1x16x4xf32> to vector<16x4xf32>
    %c0_2 = arith.constant 0 : index
    %c0_3 = arith.constant 0 : index
    %c0_4 = arith.constant 0 : index
    %2 = vector.load %arg1[%c0_2, %c0_3, %c0_4] : memref<1x1x4xf32, #tpu.memory_space<vmem>>, vector<1x1x4xf32>
    %3 = vector.shape_cast %2 : vector<1x1x4xf32> to vector<1x4xf32>
    %c0_5 = arith.constant 0 : index
    %c0_6 = arith.constant 0 : index
    %c0_7 = arith.constant 0 : index
    %4 = vector.load %arg2[%c0_5, %c0_6, %c0_7] : memref<1x1x4xf32, #tpu.memory_space<vmem>>, vector<1x1x4xf32>
    %5 = vector.shape_cast %4 : vector<1x1x4xf32> to vector<1x4xf32>
    %cst = arith.constant dense<0.000000e+00> : vector<4xf32>
    %6 = vector.multi_reduction <add>, %1, %cst [0] : vector<16x4xf32> to vector<4xf32>
    %7 = vector.shape_cast %6 : vector<4xf32> to vector<1x4xf32>
    %cst_8 = arith.constant 6.250000e-02 : f32
    %8 = vector.broadcast %cst_8 : f32 to vector<1x4xf32>
    %9 = arith.mulf %7, %8 : vector<1x4xf32>
    %10 = arith.mulf %1, %1 : vector<16x4xf32>
    %cst_9 = arith.constant dense<0.000000e+00> : vector<4xf32>
    %11 = vector.multi_reduction <add>, %10, %cst_9 [0] : vector<16x4xf32> to vector<4xf32>
    %12 = vector.shape_cast %11 : vector<4xf32> to vector<1x4xf32>
    %13 = arith.mulf %7, %9 : vector<1x4xf32>
    %14 = arith.subf %12, %13 : vector<1x4xf32>
    %cst_10 = arith.constant 0.000000e+00 : f32
    %15 = vector.broadcast %cst_10 : f32 to vector<1x4xf32>
    %16 = arith.maximumf %14, %15 : vector<1x4xf32>
    %cst_11 = arith.constant 0.0666666701 : f32
    %17 = vector.broadcast %cst_11 : f32 to vector<1x4xf32>
    %18 = arith.mulf %16, %17 : vector<1x4xf32>
    %19 = math.sqrt %18 : vector<1x4xf32>
    %cst_12 = arith.constant 9.99999974E-6 : f32
    %20 = vector.broadcast %cst_12 : f32 to vector<1x4xf32>
    %21 = arith.addf %19, %20 : vector<1x4xf32>
    %22 = tpu.reciprocal %21 : vector<1x4xf32> -> vector<1x4xf32>
    %23 = arith.mulf %3, %22 : vector<1x4xf32>
    %24 = arith.mulf %9, %23 : vector<1x4xf32>
    %25 = arith.subf %5, %24 : vector<1x4xf32>
    %26 = vector.broadcast %23 : vector<1x4xf32> to vector<16x4xf32>
    %27 = arith.mulf %1, %26 : vector<16x4xf32>
    %28 = vector.broadcast %25 : vector<1x4xf32> to vector<16x4xf32>
    %29 = arith.addf %27, %28 : vector<16x4xf32>
    %c0_13 = arith.constant 0 : index
    %c0_14 = arith.constant 0 : index
    %c0_15 = arith.constant 0 : index
    %30 = vector.load %arg4[%c0_13, %c0_14, %c0_15] : memref<1x16x4xf32, #tpu.memory_space<vmem>>, vector<1x16x4xf32>
    %31 = vector.shape_cast %30 : vector<1x16x4xf32> to vector<16x4xf32>
    %32 = vector.shape_cast %29 : vector<16x4xf32> to vector<1x16x4xf32>
    tpu.vector_store %arg4[%c0_13, %c0_14, %c0_15], %32 {strides = array<i32>} : memref<1x16x4xf32, #tpu.memory_space<vmem>>, vector<1x16x4xf32>,
    return
  }
  func.func @transform_0(%arg0: i32) -> (i32, i32, i32) {
    %c0_i32 = arith.constant 0 : i32
    %c0_i32_0 = arith.constant 0 : i32
    %c0_i32_1 = arith.constant 0 : i32
    return %arg0, %c0_i32, %c0_i32_0 : i32, i32, i32
  }
  func.func @transform_1(%arg0: i32) -> (i32, i32, i32) {
    %c0_i32 = arith.constant 0 : i32
    %c0_i32_0 = arith.constant 0 : i32
    %c0_i32_1 = arith.constant 0 : i32
    return %arg0, %c0_i32, %c0_i32_0 : i32, i32, i32
  }
  func.func @transform_2(%arg0: i32) -> (i32, i32, i32) {
    %c0_i32 = arith.constant 0 : i32
    %c0_i32_0 = arith.constant 0 : i32
    %c0_i32_1 = arith.constant 0 : i32
    return %arg0, %c0_i32, %c0_i32_0 : i32, i32, i32
  }
  func.func @transform_3(%arg0: i32) -> (i32, i32, i32) {
    %c0_i32 = arith.constant 0 : i32
    %c0_i32_0 = arith.constant 0 : i32
    %c0_i32_1 = arith.constant 0 : i32
    return %arg0, %c0_i32, %c0_i32_0 : i32, i32, i32
  }
}

</mosaic_0001>

<bundles_post_ra>
// kernel: tpu_custom_call.1
= control target key start
LH: loop header
LB: loop body
LE: loop exit
PB: predicated region body
PF: predicated region fallthrough
CT: control target
= control target key end

     0   :  { %s962_s0 = inlined_call_operand.hbm [shape: f32[2,1,4], index: 0, kind: input, shape index: {}]   ;;  %s963_s1 = inlined_call_operand.hbm [shape: f32[2,1,4], index: 1, kind: input, shape index: {}]   ;;  %s964_s2 = inlined_call_operand.hbm [shape: f32[2,16,4], index: 2, kind: input, shape index: {}]   ;;  %s965_s3 = inlined_call_operand.hbm [shape: f32[2,16,4], index: 3, kind: output, shape index: {}]  }
   0x1   :  { %970 = sst [smem:[#allocation12_spill]] %s962_s0 }
   0x2   :  { %8 = vsyncpa [#allocation3], 0 }
   0x3   :  { %10 = vsyncpa [#allocation3 + $0x1], 0 }
   0x4   :  { %11 = vsyncpa [#allocation6], 0 }
   0x5   :  { %13 = vsyncpa [#allocation6 + $0x1], 0 }
   0x6   :  { %14 = vsyncpa [#allocation4], 0 }
   0x7   :  { %16 = vsyncpa [#allocation4 + $0x1], 0  ;;  %s710_s12 = smov 0   ;;  %s712_s13 = smov 0  }
   0x8   :  { %s714_s14 = smov 0   ;;  %s716_s15 = smov 0  }
   0x9 LB: > { %s731_s16 = sadd.s32 4294967295, %s680_s15   ;;  %s438_s17 = sadd.s32 4294967294, %s680_s15   ;;  %s680_s15 = sphi %s716_s15, %s989_s15   ;;  %s676_s14 = sphi %s714_s14, %s988_s14   ;;  %s672_s13 = sphi %s712_s13, %s987_s13   ;;  %s668_s12 = sphi %s710_s12, %s986_s12  }
   0xa   : > { %s735_s18 = sadd.s32 1, %s680_s15   ;;  %s29_s19 = sadd.s32 1, %s676_s14 }
   0xb   : > { %s26_s20 = ssub.s32 %s680_s15, %s735_s18  ;;  %p36_p0 = scmp.ne.s32.totalorder %s676_s14, %s672_s13 }
   0xc   : > { %p27_p1 = scmp.eq.s32.totalorder %s26_s20, 0  ;;  %p37_p2 = scmp.eq.s32.totalorder %s680_s15, 0 }
   0xd   : > { %p42_p3 = scmp.ne.s32.totalorder %s672_s13, %s668_s12  ;;  %p43_p4 = scmp.eq.s32.totalorder %s731_s16, 0 }
   0xe   : > { %s747_s21 = scalar_select %p27_p1, %s676_s14, %s29_s19  }
   0xf   : > { %p38_p5 = por %p37_p2, %p36_p0  ;;  %p749_p6 = por %p43_p4, %p42_p3 }
  0x10   : > { %p118_p7 = scmp.eq.s32.totalorder %s731_s16, 1  ;;  %p124_p8 = scmp.eq.s32.totalorder %s438_s17, 1 }
  0x11   : > { %s971_s22 = scalar_select %p749_p6, 1, 0 }
  0x12   : > { %p478_p10 = scmp.lt.s32.totalorder %s680_s15, 2  ;;  %p756_p11 = por %p118_p7, %p36_p0 }
  0x13   : > { %p760_p12 = por %p124_p8, %p42_p3  ;;  %s765_s25 = sand.u32 1, %s676_s14  }
  0x14   : > { %s972_s23 = scalar_select %p756_p11, 1, 0 }
  0x15   : > { %s973_s24 = scalar_select %p760_p12, 1, 0 }
  0x16   : > { %s441_s26 = sshll.u32 %s680_s15, 4  ;;  %p768_p13 = pnand %p478_p10, %p38_p5 }
  0x17   : > { %s161_s28 = sand.u32 1, %s680_s15   ;;  %s778_s4 = scalar_lea.hbm %s963_s1, %s441_s26 }
  0x18   : > { %s974_s27 = scalar_select %p768_p13, 1, 0 }
  0x19   : > { %s164_s5 = scalar_lea.vmem [#allocation5], %s765_s25  ;;  %s785_s8 = scalar_lea.sflag [#allocation6], %s161_s28 }
  0x1a   : > { %s171_s6 = sshll.u32 %s164_s5, 4  ;;  %s520_s9 = scalar_lea.hbm %s778_s4, 16  ;;  %s782_s6 = int_to_ptr.vmem [resolvable:$true] %s171_s6 }
  0x1b   : > { %p521_p1 = scmp.ne.s32.totalorder %s778_s4, %s520_s9  ;;  %p791_p2 = pneg %p768_p13 }
  0x1c   : > { %s525_s19 = scalar_lea.hbm %s963_s1, 32  ;;  %p526_p5 = scmp.lt.u32.totalorder %s778_s4, %s963_s1 }
  0x1d   : > { %p523_p3 = pnand %p791_p2, %p521_p1  ;;  %p527_p7 = scmp.lt.u32.totalorder %s525_s19, %s520_s9 }
  0x1e   : > { %p529_p10 = scmp.lt.u32.totalorder %s520_s9, %s778_s4 }
  0x1f   : > { %p524_p4 = pneg %p523_p3  ;;  %p528_p8 = por %p527_p7, %p526_p5 }
  0x21   : > { %p530_p9 = por %p529_p10, %p528_p8 }
  0x23   : > { %p531_p0 = pnand %p530_p9, %p524_p4 }
  0x25   : > { %534 = shalt.err (!%p531_p0)
}
  0x26   : > { %s535_s28 = scalar_lea.vmem %s782_s6, 16  ;;  %s682_s30 = smov [#allocation5]  }
  0x27   : > { %p536_p1 = scmp.ne.s32.totalorder %s782_s6, %s535_s28  ;;  %s540_s5 = sshll.u32 %s682_s30, 4  ;;  %s541_s5 = int_to_ptr.vmem [resolvable:$false] %s540_s5 }
  0x28   : > { %s542_s11 = scalar_lea.vmem %s541_s5, 32  ;;  %p543_p11 = scmp.lt.s32.totalorder %s782_s6, %s541_s5 }
  0x29   : > { %p538_p3 = pnand %p536_p1, %p791_p2  ;;  %p544_p6 = scmp.lt.s32.totalorder %s542_s11, %s535_s28 }
  0x2b   : > { %p539_p12 = pneg %p538_p3  ;;  %p545_p5 = por %p544_p6, %p543_p11 }
  0x2d   : > { %p546_p7 = pnand %p545_p5, %p539_p12 }
  0x2f   : > { %549 = shalt.err (!%p546_p7)
}
  0x30   : > { %470 = dma.hbm_to_vmem [thread:$0]  (!%p768_p13), %s778_s4, 16, %s782_s6, %s785_s8  }
  0x31   : > { %p197_p9 = scmp.lt.s32.totalorder %s680_s15, 3  ;;  %s976_s0 = sld [smem:[#allocation12_spill]] }
  0x32   : > { %p977_p6 = scmp.ge.s32.totalorder %s680_s15, 1  ;;  %s147_s29 = scalar_lea.vmem [#allocation2], %s765_s25 }
  0x33   : > { %s154_s28 = sshll.u32 %s147_s29, 4  ;;  %s145_s4 = scalar_lea.sflag [#allocation3], %s765_s25  ;;  %s155_s28 = int_to_ptr.vmem [resolvable:$true] %s154_s28 }
  0x34   : > { %p825_p11 = pnand %p977_p6, %p197_p9 }
  0x36   : > { %s978_s20 = scalar_select %p825_p11, 1, 0 }
  0x37   : > { %s821_s19 = scalar_lea.hbm %s976_s0, %s441_s26  ;;  %s555_s5 = scalar_lea.hbm %s976_s0, 32 }
  0x38   : > { %s550_s6 = scalar_lea.hbm %s821_s19, 16  ;;  %p556_p8 = scmp.lt.u32.totalorder %s821_s19, %s976_s0 }
  0x39   : > { %p551_p12 = scmp.ne.s32.totalorder %s821_s19, %s550_s6  ;;  %p557_p10 = scmp.lt.u32.totalorder %s555_s5, %s550_s6 }
  0x3a   : > { %p559_p3 = scmp.lt.u32.totalorder %s550_s6, %s821_s19 }
  0x3b   : > { %p553_p0 = pnand %p551_p12, %p791_p2  ;;  %p558_p1 = por %p557_p10, %p556_p8 }
  0x3d   : > { %p554_p4 = pneg %p553_p0  ;;  %p560_p5 = por %p559_p3, %p558_p1 }
  0x3f   : > { %p561_p7 = pnand %p560_p5, %p554_p4 }
  0x41   : > { %564 = shalt.err (!%p561_p7)
}
  0x42   : > { %s565_s17 = scalar_lea.vmem %s155_s28, 16  ;;  %s683_s29 = smov [#allocation2]  }
  0x43   : > { %p566_p9 = scmp.ne.s32.totalorder %s155_s28, %s565_s17  ;;  %s570_s7 = sshll.u32 %s683_s29, 4  ;;  %s571_s7 = int_to_ptr.vmem [resolvable:$false] %s570_s7 }
  0x44   : > { %s572_s26 = scalar_lea.vmem %s571_s7, 32  ;;  %p573_p0 = scmp.lt.s32.totalorder %s155_s28, %s571_s7 }
  0x45   : > { %p568_p6 = pnand %p566_p9, %p791_p2  ;;  %p574_p11 = scmp.lt.s32.totalorder %s572_s26, %s565_s17 }
  0x47   : > { %p569_p12 = pneg %p568_p6  ;;  %p575_p13 = por %p574_p11, %p573_p0 }
  0x49   : > { %p576_p8 = pnand %p575_p13, %p569_p12 }
  0x4b   : > { %579 = shalt.err (!%p576_p8)
}
  0x4c   : > { %p979_p10 = scmp.ne.s32.totalorder %s974_s27, 0  ;;  %s454_s6 = sshll.u32 %s680_s15, 8 }
  0x4d   : > { %s980_s30 = sshll.u32 %s765_s25, 4  ;;  %s854_s0 = scalar_lea.hbm %s964_s2, %s454_s6 }
  0x4e   : > { %467 = dma.hbm_to_vmem [thread:$0]  (!%p979_p10), %s821_s19, 16, %s155_s28, %s145_s4  }
  0x4f   : > { %s182_s5 = scalar_lea.vmem [#allocation7], %s980_s30  ;;  %s580_s7 = scalar_lea.hbm %s854_s0, 256 }
  0x50   : > { %s189_s11 = sshll.u32 %s182_s5, 4  ;;  %p581_p13 = scmp.ne.s32.totalorder %s854_s0, %s580_s7  ;;  %s856_s11 = int_to_ptr.vmem [resolvable:$true] %s189_s11 }
  0x51   : > { %s585_s28 = scalar_lea.hbm %s964_s2, 512  ;;  %p586_p1 = scmp.lt.u32.totalorder %s854_s0, %s964_s2 }
  0x52   : > { %p583_p11 = pnand %p581_p13, %p791_p2  ;;  %p587_p3 = scmp.lt.u32.totalorder %s585_s28, %s580_s7 }
  0x53   : > { %p589_p7 = scmp.lt.u32.totalorder %s580_s7, %s854_s0 }
  0x54   : > { %p584_p4 = pneg %p583_p11  ;;  %p588_p5 = por %p587_p3, %p586_p1 }
  0x56   : > { %p590_p9 = por %p589_p7, %p588_p5 }
  0x58   : > { %p591_p6 = pnand %p590_p9, %p584_p4 }
  0x5a   : > { %594 = shalt.err (!%p591_p6)
}
  0x5b   : > { %s595_s26 = scalar_lea.vmem %s856_s11, 256  ;;  %s684_s6 = smov [#allocation7]  }
  0x5c   : > { %p596_p12 = scmp.ne.s32.totalorder %s856_s11, %s595_s26  ;;  %s600_s30 = sshll.u32 %s684_s6, 4  ;;  %s601_s30 = int_to_ptr.vmem [resolvable:$false] %s600_s30 }
  0x5d   : > { %s602_s5 = scalar_lea.vmem %s601_s30, 512  ;;  %p603_p13 = scmp.lt.s32.totalorder %s856_s11, %s601_s30 }
  0x5e   : > { %p598_p0 = pnand %p596_p12, %p791_p2  ;;  %p604_p11 = scmp.lt.s32.totalorder %s602_s5, %s595_s26 }
  0x60   : > { %p599_p8 = pneg %p598_p0  ;;  %p605_p1 = por %p604_p11, %p603_p13 }
  0x62   : > { %p606_p3 = pnand %p605_p1, %p599_p8 }
  0x64   : > { %609 = shalt.err (!%p606_p3)
}
  0x65   : > { %s685_s9 = smov 128   ;;  %s686_s29 = smov 8  }
  0x66   : > { %473 = dma.hbm_to_vmem [thread:$0]  (!%p979_p10), %s854_s0, 256, %s856_s11, %s785_s8, %s685_s9, %s685_s9, %s686_s29  }
  0x67   : > { %p981_p2 = scmp.ne.s32.totalorder %s978_s20, 0 }
  0x68   : > { %s883_s10 = sand.u32 (!%p981_p2), 1, %s672_s13   ;;  %p982_p4 = scmp.ne.s32.totalorder (!%p981_p2), %s971_s22, 0 }
  0x69   : > { %201 = sbr.rel (%p981_p2) target bundleno = 197 (0xc5), region = 32  ;;  %s204_s7 = scalar_lea.sflag (!%p981_p2), [#allocation3], %s883_s10 }
  0x6a   : > { %s206_s19 = scalar_lea.vmem (!%p981_p2), [#allocation2], %s883_s10 }
  0x70   : > { %655 = dma.done.wait (%p982_p4), %s204_s7, 16  }
  0x71   : > { %657 = vsyncadd (%p982_p4), %s204_s7, 4294967280  ;;  %s211_s0 = sand.u32 1, %s731_s16   ;;  %s214_s8 = scalar_lea.vmem [#allocation5], %s883_s10 }
  0x72   : > { %s212_s27 = scalar_lea.sflag [#allocation6], %s211_s0 }
  0x73   : > { %659 = dma.done.wait (%p982_p4), %s212_s27, 272  }
  0x74   : > { %661 = vsyncadd (%p982_p4), %s212_s27, 4294967024  ;;  %s447_s20 = sshll.u32 %s883_s10, 4  ;;  %vm258_vm0 = vcmask 31744   ;;  %v297_v33 = vlaneseq  ;;  %v256_v35 = vld [vmem:[%s206_s19] sm:$0x1]  ;;  %s455_s28 = sshll.u32 %s731_s16, 8 }
  0x75   : > { %s223_s11 = scalar_lea.vmem [#allocation7], %s447_s20  ;;  %v257_v39 = vld [vmem:[%s214_s8] sm:$0x1]  ;;  %s253_s22 = scalar_lea.vmem [#allocation8], %s447_s20 }
  0x76   : > { %v254_v0 = vld [vmem:[%s223_s11] sm:$0xff]  ;;  %v255_v1 = vld [vmem:[%s223_s11 + $0x8] sm:$0xff]  ;;  %v298_v34 = vshrl.u32 %v297_v33, 7  ;;  %s328_s25 = sshll.u32 %s253_s22, 4  ;;  %s916_s26 = scalar_lea.hbm %s965_s3, %s455_s28  ;;  %s911_s25 = int_to_ptr.vmem [resolvable:$true] %s328_s25 }
  0x77   : > { %v259_v2 = vsel %vm258_vm0, %v254_v0, 0.0  ;;  %v260_v3 = vsel %vm258_vm0, %v255_v1, 0.0  ;;  %v269_v4 = vmul.f32 %v254_v0, %v254_v0  ;;  %v270_v5 = vmul.f32 %v255_v1, %v255_v1  ;;  %s315_s6 = scalar_lea.sflag [#allocation4], %s883_s10  ;;  %s610_s30 = scalar_lea.vmem %s911_s25, 256 }
  0x78   : > { %v261_v6 = vadd.f32 %v260_v3, %v259_v2  ;;  %v299_v36 = vsub.s32 0, %v298_v34  ;;  %p611_p10 = scmp.ne.s32.totalorder %s911_s25, %s610_s30  ;;  %p983_p5 = scmp.ne.s32.totalorder %s972_s23, 0 }
  0x79   : > { %v271_v7 = vsel %vm258_vm0, %v269_v4, 0.0  ;;  %v272_v8 = vsel %vm258_vm0, %v270_v5, 0.0  ;;  %s687_s16 = smov [#allocation8]  }
  0x7a   : > { %v262_v9 = vrot.slane %v261_v6, 4  ;;  %v273_v10 = vadd.f32 %v272_v8, %v271_v7  ;;  %p612_p7 = pnand %p611_p10, %p983_p5  ;;  %s614_s5 = sshll.u32 %s687_s16, 4  ;;  %s615_s5 = int_to_ptr.vmem [resolvable:$false] %s614_s5 }
  0x7b   : > { %s616_s9 = scalar_lea.vmem %s615_s5, 512  ;;  %p617_p6 = scmp.lt.s32.totalorder %s911_s25, %s615_s5 }
  0x7c   : > { %v263_v11 = vadd.f32 %v262_v9, %v261_v6  ;;  %v274_v12 = vrot.slane %v273_v10, 4  ;;  %p613_p9 = pneg %p612_p7  ;;  %p618_p12 = scmp.lt.s32.totalorder %s616_s9, %s610_s30 }
  0x7e   : > { %v264_v13 = vrot.slane %v263_v11, 2  ;;  %v275_v14 = vadd.f32 %v274_v12, %v273_v10  ;;  %p619_p0 = por %p618_p12, %p617_p6 }
  0x80   : > { %v265_v15 = vadd.f32 %v264_v13, %v263_v11  ;;  %v276_v16 = vrot.slane %v275_v14, 2  ;;  %p620_p8 = pnand %p619_p0, %p613_p9 }
  0x82   : > { %v266_v17 = vrot.slane %v265_v15, 1  ;;  %v277_v18 = vadd.f32 %v276_v16, %v275_v14 }
  0x84   : > { %v267_v19 = vadd.f32 %v266_v17, %v265_v15  ;;  %v278_v20 = vrot.slane %v277_v18, 1 }
  0x86   : > { %v268_v21 = vmul.f32 0.0625, %v267_v19  ;;  %v279_v22 = vadd.f32 %v278_v20, %v277_v18 }
  0x88   : > { %v280_v23 = vmul.f32 %v268_v21, %v267_v19 }
  0x8a   : > { %v281_v24 = vsub.f32 %v279_v22, %v280_v23 }
  0x8c   : > { %v282_v25 = vmax.f32 %v281_v24, 0.0 }
  0x8e   : > { %v283_v26 = vmul.f32 0.06666667, %v282_v25 }
  0x90   : > { %516 = vrsqrt.f32 %v283_v26  ;;  %vm286_vm1 = vcmp.eq.f32.partialorder %v283_v26, inf  ;;  %v289_v28 = vand.u32 2147483648, %v283_v26  ;;  %vm288_vm2 = vcmp.eq.f32.partialorder %v283_v26, 0.0 }
  0x9a   : > { %v517_v27 = vpop.eup %516 }
  0x9b   : > { %v285_v29 = vmul.f32 %v517_v27, %v283_v26 }
  0x9d   : > { %v287_v30 = vsel %vm286_vm1, %v283_v26, %v285_v29 }
  0x9e   : > { %v290_v31 = vsel %vm288_vm2, %v289_v28, %v287_v30 }
  0x9f   : > { %v291_v32 = vadd.f32 1e-05, %v290_v31 }
  0xa1   : > { %518 = vrcp.f32 %v291_v32 }
  0xab   : > { %v519_v37 = vpop.eup %518 }
  0xac   : > { %v293_v38 = vmul.f32 %v519_v37, %v256_v35 }
  0xae   : > { %v294_v40 = vmul.f32 %v293_v38, %v268_v21  ;;  %v300_v41 = vrot.slane %v293_v38, %v299_v36 }
  0xb0   : > { %v295_v42 = vsub.f32 %v257_v39, %v294_v40  ;;  %v302_v43 = vmul.f32 %v300_v41, %v254_v0  ;;  %v303_v44 = vmul.f32 %v300_v41, %v255_v1 }
  0xb2   : > { %v308_v45 = vrot.slane %v295_v42, %v299_v36 }
  0xb4   : > { %v310_v46 = vadd.f32 %v308_v45, %v302_v43  ;;  %v311_v47 = vadd.f32 %v308_v45, %v303_v44 }
  0xb6   : > { %312 = vst.msk [vmem:[%s253_s22] sm:$0xff] %vm258_vm0, %v310_v46  ;;  %313 = vst.msk [vmem:[%s253_s22 + $0x8] sm:$0xff] %vm258_vm0, %v311_v47 }
  0xb7   : > { %623 = shalt.err (!%p620_p8)
}
  0xb8   : > { %s624_s29 = scalar_lea.hbm %s916_s26, 256  ;;  %s628_s0 = scalar_lea.hbm %s965_s3, 512 }
  0xb9   : > { %p625_p13 = scmp.ne.s32.totalorder %s916_s26, %s624_s29  ;;  %p629_p3 = scmp.lt.u32.totalorder %s916_s26, %s965_s3 }
  0xba   : > { %p630_p2 = scmp.lt.u32.totalorder %s628_s0, %s624_s29  ;;  %p632_p10 = scmp.lt.u32.totalorder %s624_s29, %s916_s26 }
  0xbb   : > { %p626_p11 = pnand %p625_p13, %p983_p5 }
  0xbc   : > { %p631_p4 = por %p630_p2, %p629_p3 }
  0xbd   : > { %p627_p1 = pneg %p626_p11 }
  0xbe   : > { %p633_p7 = por %p632_p10, %p631_p4 }
  0xc0   : > { %p634_p9 = pnand %p633_p7, %p627_p1 }
  0xc2   : > { %637 = shalt.err (!%p634_p9)
}
  0xc3   : > { %s688_s20 = smov 128   ;;  %s689_s11 = smov 8  }
  0xc4   : > { %462 = dma.vmem_to_hbm [thread:$0]  (%p983_p5), %s911_s25, 256, %s916_s26, %s315_s6, %s688_s20, %s688_s20, %s689_s11  }
  0xc5 PF: > { %s343_s22 = sand.u32 1, %s668_s12   ;;  %p984_p6 = scmp.ne.s32.totalorder %s973_s24, 0 }
  0xc6   : > { %p985_p12 = scmp.ge.s32.totalorder %s680_s15, 2  ;;  %s344_s28 = scalar_lea.sflag [#allocation4], %s343_s22 }
  0xc8   : > { %p475_p0 = pnand %p985_p12, %p984_p6 }
  0xca   : > { %663 = dma.done.wait (!%p475_p0), %s344_s28, 256  }
  0xcb   : > { %665 = vsyncadd (!%p475_p0), %s344_s28, 4294967040  ;;  %p19_p8 = scmp.ge.s32.totalorder %s735_s18, 4   ;;  %s986_s12 = smov %s672_s13 }
  0xcc   : > { %s987_s13 = smov %s676_s14  ;;  %s988_s14 = smov %s747_s21 }
  0xcd   : > { %s989_s15 = smov %s735_s18  ;;  %21 = sbr.rel (!%p19_p8) target bundleno = 9 (0x9), region = 101 }
  0xd4   :  { %349 = vsyncpa [#allocation3], 1 }
  0xd5   :  { %351 = vsyncpa [#allocation3 + $0x1], 1 }
  0xd6   :  { %352 = vsyncpa [#allocation6], 1 }
  0xd7   :  { %354 = vsyncpa [#allocation6 + $0x1], 1 }
  0xd8   :  { %355 = vsyncpa [#allocation4], 1 }
  0xd9   :  { %357 = vsyncpa [#allocation4 + $0x1], 1 }

</bundles_post_ra>
